<compile_context>
chip_gen: v7x
topology: tpu7x:2x2x1
jax: 0.10.0
libtpu: 0.0.40
codegen_flags: <defaults>
</compile_context>

<pallas_src>
import jax
import jax.numpy as jnp
from jax import lax
from jax.experimental import pallas as pl
from jax.experimental.pallas import tpu as pltpu


# ---------------------------------------------------------------------------
# VMEM budget (generation-aware).
# ---------------------------------------------------------------------------
def _vmem_limit_bytes() -> int:
    cap = 128 * 1024 * 1024
    try:
        cap = int(getattr(pltpu.get_tpu_info(), "vmem_capacity_bytes", cap))
    except Exception:
        pass
    # Leave ~20% headroom for compiler-internal scratch:
    #   v7x (64 MiB physical)  -> ~51 MiB limit
    #   v5e/v6e (128 MiB)      -> ~102 MiB limit
    return min(int(cap * 0.8), 112 * 1024 * 1024)


# ---------------------------------------------------------------------------
# Path A: whole row (all of T) per block.  No masking needed: block last dim
# equals the full array dim, ragged row blocks are masked by Pallas on store.
# ---------------------------------------------------------------------------
def _make_fullrow_kernel(eps: float, t: int):
    inv_t = 1.0 / float(t)

    def kernel(x_ref, o_ref):
        x = x_ref[...].astype(jnp.float32)
        mean = jnp.sum(x, axis=-1, keepdims=True) * inv_t
        xc = x - mean
        var = jnp.sum(xc * xc, axis=-1, keepdims=True) * inv_t
        # One reciprocal per row, broadcast multiply (no per-element divide).
        inv = pl.reciprocal(jnp.sqrt(var) + eps, approx=False)
        o_ref[...] = (xc * inv).astype(o_ref.dtype)

    return kernel


def _normalize_fullrow(xf, eps, rows, T, itemsize, sublane, vmem_limit,
                       max_block_bytes):
    row_bytes_f32 = T * 4  # in-kernel temporaries are f32; size conservatively
    # Grow toward a ~2-6 MiB block (amortize the ~0.35us per-grid-step cost)
    # while keeping >= 2 grid steps so megacore/TC sharding stays possible.
    target = min(4 * 1024 * 1024, max_block_bytes)
    rows_per_block = sublane
    while (rows_per_block * 2 * row_bytes_f32 <= target
           and rows >= rows_per_block * 4):
        rows_per_block *= 2

    grid = (pl.cdiv(rows, rows_per_block),)
    return pl.pallas_call(
        _make_fullrow_kernel(eps, T),
        out_shape=jax.ShapeDtypeStruct((rows, T), xf.dtype),
        grid=grid,
        in_specs=[pl.BlockSpec((rows_per_block, T), lambda i: (i, 0))],
        out_specs=pl.BlockSpec((rows_per_block, T), lambda i: (i, 0)),
        compiler_params=pltpu.CompilerParams(
            dimension_semantics=("parallel",),
            vmem_limit_bytes=vmem_limit,
        ),
        cost_estimate=pl.CostEstimate(
            flops=6 * rows * T,
            transcendentals=2 * rows,
            bytes_accessed=2 * rows * T * itemsize,
        ),
    )(xf)


# ---------------------------------------------------------------------------
# Path B: long-T fallback.  Two sweeps over T chunks:
#   sweep 1: per-row sum / sumsq accumulators in VMEM scratch -> mean, 1/(std+eps)
#   sweep 2: reload x and write (x - mean) * inv
# ---------------------------------------------------------------------------
def _make_stats_kernel(eps: float, t_valid: int, t_chunk: int,
                       n_chunks: int, ragged: bool):
    inv_t = 1.0 / float(t_valid)

    def kernel(x_ref, mean_ref, inv_ref, sum_sc, sq_sc):
        j = pl.program_id(1)

        @pl.when(j == 0)
        def _():
            sum_sc[...] = jnp.zeros_like(sum_sc)
            sq_sc[...] = jnp.zeros_like(sq_sc)

        x = x_ref[...].astype(jnp.float32)
        if ragged:  # static: only emit mask code when T % t_chunk != 0
            lane = lax.broadcasted_iota(jnp.int32, x.shape, 1) + j * t_chunk
            x = jnp.where(lane < t_valid, x, 0.0)

        sum_sc[...] += jnp.sum(x, axis=-1, keepdims=True)
        sq_sc[...] += jnp.sum(x * x, axis=-1, keepdims=True)

        @pl.when(j == n_chunks - 1)
        def _():
            mean = sum_sc[...] * inv_t
            # Single-pass E[x^2] - mean^2; clamp tiny negative rounding error.
            var = jnp.maximum(sq_sc[...] * inv_t - mean * mean, 0.0)
            mean_ref[...] = mean
            inv_ref[...] = pl.reciprocal(jnp.sqrt(var) + eps, approx=False)

    return kernel


def _apply_kernel(x_ref, mean_ref, inv_ref, o_ref):
    x = x_ref[...].astype(jnp.float32)
    o_ref[...] = ((x - mean_ref[...]) * inv_ref[...]).astype(o_ref.dtype)


def _normalize_chunked(xf, eps, rows, T, itemsize, sublane, vmem_limit,
                       max_block_bytes):
    rows_pb = sublane
    t_chunk = max(128, (max_block_bytes // (rows_pb * 4)) // 128 * 128)
    t_chunk = min(t_chunk, pl.cdiv(T, 128) * 128)
    n_chunks = pl.cdiv(T, t_chunk)
    n_row_groups = pl.cdiv(rows, rows_pb)
    ragged = (T % t_chunk) != 0

    mean, inv = pl.pallas_call(
        _make_stats_kernel(eps, T, t_chunk, n_chunks, ragged),
        out_shape=(jax.ShapeDtypeStruct((rows, 1), jnp.float32),
                   jax.ShapeDtypeStruct((rows, 1), jnp.float32)),
        grid=(n_row_groups, n_chunks),
        in_specs=[pl.BlockSpec((rows_pb, t_chunk), lambda i, j: (i, j))],
        out_specs=[pl.BlockSpec((rows_pb, 1), lambda i, j: (i, 0)),
                   pl.BlockSpec((rows_pb, 1), lambda i, j: (i, 0))],
        scratch_shapes=[pltpu.VMEM((rows_pb, 1), jnp.float32),
                        pltpu.VMEM((rows_pb, 1), jnp.float32)],
        compiler_params=pltpu.CompilerParams(
            dimension_semantics=("parallel", "arbitrary"),
            vmem_limit_bytes=vmem_limit,
        ),
        cost_estimate=pl.CostEstimate(
            flops=3 * rows * T,
            transcendentals=2 * rows,
            bytes_accessed=rows * T * itemsize,
        ),
    )(xf)

    return pl.pallas_call(
        _apply_kernel,
        out_shape=jax.ShapeDtypeStruct((rows, T), xf.dtype),
        grid=(n_row_groups, n_chunks),
        in_specs=[pl.BlockSpec((rows_pb, t_chunk), lambda i, j: (i, j)),
                  pl.BlockSpec((rows_pb, 1), lambda i, j: (i, 0)),
                  pl.BlockSpec((rows_pb, 1), lambda i, j: (i, 0))],
        out_specs=pl.BlockSpec((rows_pb, t_chunk), lambda i, j: (i, j)),
        compiler_params=pltpu.CompilerParams(
            dimension_semantics=("parallel", "parallel"),
            vmem_limit_bytes=vmem_limit,
        ),
        cost_estimate=pl.CostEstimate(
            flops=2 * rows * T,
            transcendentals=0,
            bytes_accessed=2 * rows * T * itemsize,
        ),
    )(xf, mean, inv)


# ---------------------------------------------------------------------------
# Public wrapper.
# ---------------------------------------------------------------------------
def normalize_audio(x: jax.Array, eps: float = 1e-6, *,
                    max_block_bytes: int | None = None) -> jax.Array:
    """Pallas implementation of NormalizeAudio.forward.

    Accepts (B, T) or (B, C, T); returns (B, 1, T) / (B, C, T).
    """
    if x.ndim == 2:
        x = x[:, None, :]  # unsqueeze(1)
    assert x.ndim == 3, f"expected (B, T) or (B, C, T), got {x.shape}"
    B, C, T = x.shape
    rows = B * C

    itemsize = jnp.dtype(x.dtype).itemsize
    sublane = {4: 8, 2: 16, 1: 32}.get(itemsize, 8)

    vmem_limit = _vmem_limit_bytes()
    if max_block_bytes is None:
        # Per grid step the kernel holds ~2x(in)+2x(out) pipeline buffers plus
        # ~2 full-block f32 temporaries -> keep a single block under ~1/8 of
        # the limit (~6 MiB on v7x, ~12 MiB on v5e/v6e).
        max_block_bytes = vmem_limit // 8

    xf = x.reshape(rows, T)  # contiguous reshape: no HBM copy

    if sublane * T * 4 <= max_block_bytes:
        out = _normalize_fullrow(xf, eps, rows, T, itemsize, sublane,
                                 vmem_limit, max_block_bytes)
    else:
        out = _normalize_chunked(xf, eps, rows, T, itemsize, sublane,
                                 vmem_limit, max_block_bytes)

    return out.reshape(B, C, T)


# ---------------------------------------------------------------------------
# Reference + tests.
# ---------------------------------------------------------------------------
def _reference(x: jax.Array, eps: float = 1e-6) -> jax.Array:
    if x.ndim == 2:
        x = x[:, None, :]
    mean = jnp.mean(x, axis=2, keepdims=True)
    std = jnp.sqrt(jnp.mean((x - mean) ** 2, axis=2, keepdims=True))
    return (x - mean) / (std + eps)


if __name__ == "__main__":
    key = jax.random.PRNGKey(0)
    k1, k2, k3 = jax.random.split(key, 3)

    # Case 1: raw waveform, 2-D (B, T) — module unsqueezes to (B, 1, T).
    x2d = jax.random.normal(k1, (2, 256), dtype=jnp.float32) * 0.3 + 0.1
    out1 = jax.block_until_ready(normalize_audio(x2d, eps=1e-6))
    ref1 = _reference(x2d, eps=1e-6)
    assert out1.shape == (2, 1, 256), out1.shape
    assert jnp.allclose(out1, ref1, atol=1e-5, rtol=1e-5), float(
        jnp.max(jnp.abs(out1 - ref1)))

    # Case 2: 3-D input with T not a multiple of 128 — full-row path, no padding.
    x3d = jax.random.normal(k2, (2, 1, 200), dtype=jnp.float32) * 0.5 - 0.2
    out2 = jax.block_until_ready(normalize_audio(x3d, eps=1e-6))
    ref2 = _reference(x3d, eps=1e-6)
    assert out2.shape == (2, 1, 200), out2.shape
    assert jnp.allclose(out2, ref2, atol=1e-5, rtol=1e-5), float(
        jnp.max(jnp.abs(out2 - ref2)))

    # Case 3: force the long-audio T-chunked two-sweep path at a small shape
    # by shrinking the block budget (exercises accumulation + ragged T tail).
    x_long = jax.random.normal(k3, (3, 1, 700), dtype=jnp.float32) * 0.7 + 0.05
    out3 = jax.block_until_ready(
        normalize_audio(x_long, eps=1e-6, max_block_bytes=8 * 1024))
    ref3 = _reference(x_long, eps=1e-6)
    assert out3.shape == (3, 1, 700), out3.shape
    assert jnp.allclose(out3, ref3, atol=1e-5, rtol=1e-5), float(
        jnp.max(jnp.abs(out3 - ref3)))

    print("KERNEL_OK")
</pallas_src>

<mosaic_0001>
module attributes {stable_mosaic.version = 11 : i64} {
  func.func @kernel(%arg0: i32, %arg1: memref<8x256xf32, #tpu.memory_space<vmem>>, %arg2: memref<8x256xf32, #tpu.memory_space<vmem>>) attributes {dimension_semantics = [#tpu.dimension_semantics<parallel>], iteration_bounds = array<i64: 1>, scalar_prefetch = 0 : i64, scratch_operands = 0 : i64, tpu.core_type = #tpu.core_type<tc>, window_params = [{transform_indices = @transform_0, window_bounds = array<i64: 8, 256>}, {transform_indices = @transform_1, window_bounds = array<i64: 8, 256>}]} {
    %c0 = arith.constant 0 : index
    %c0_0 = arith.constant 0 : index
    %0 = vector.load %arg1[%c0, %c0_0] : memref<8x256xf32, #tpu.memory_space<vmem>>, vector<8x256xf32>
    %cst = arith.constant dense<0.000000e+00> : vector<8xf32>
    %1 = vector.multi_reduction <add>, %0, %cst [1] : vector<8x256xf32> to vector<8xf32>
    %2 = vector.shape_cast %1 : vector<8xf32> to vector<8x1xf32>
    %cst_1 = arith.constant 3.906250e-03 : f32
    %3 = vector.broadcast %cst_1 : f32 to vector<8x1xf32>
    %4 = arith.mulf %2, %3 : vector<8x1xf32>
    %5 = vector.broadcast %4 : vector<8x1xf32> to vector<8x256xf32>
    %6 = arith.subf %0, %5 : vector<8x256xf32>
    %7 = arith.mulf %6, %6 : vector<8x256xf32>
    %cst_2 = arith.constant dense<0.000000e+00> : vector<8xf32>
    %8 = vector.multi_reduction <add>, %7, %cst_2 [1] : vector<8x256xf32> to vector<8xf32>
    %9 = vector.shape_cast %8 : vector<8xf32> to vector<8x1xf32>
    %cst_3 = arith.constant 3.906250e-03 : f32
    %10 = vector.broadcast %cst_3 : f32 to vector<8x1xf32>
    %11 = arith.mulf %9, %10 : vector<8x1xf32>
    %12 = math.sqrt %11 : vector<8x1xf32>
    %cst_4 = arith.constant 9.99999997E-7 : f32
    %13 = vector.broadcast %cst_4 : f32 to vector<8x1xf32>
    %14 = arith.addf %12, %13 : vector<8x1xf32>
    %15 = tpu.reciprocal %14 : vector<8x1xf32> -> vector<8x1xf32>
    %16 = vector.broadcast %15 : vector<8x1xf32> to vector<8x256xf32>
    %17 = arith.mulf %6, %16 : vector<8x256xf32>
    %c0_5 = arith.constant 0 : index
    %c0_6 = arith.constant 0 : index
    %18 = vector.load %arg2[%c0_5, %c0_6] : memref<8x256xf32, #tpu.memory_space<vmem>>, vector<8x256xf32>
    tpu.vector_store %arg2[%c0_5, %c0_6], %17 {strides = array<i32>} : memref<8x256xf32, #tpu.memory_space<vmem>>, vector<8x256xf32>,
    return
  }
  func.func @transform_0(%arg0: i32) -> (i32, i32) {
    %c0_i32 = arith.constant 0 : i32
    %c0_i32_0 = arith.constant 0 : i32
    return %arg0, %c0_i32 : i32, i32
  }
  func.func @transform_1(%arg0: i32) -> (i32, i32) {
    %c0_i32 = arith.constant 0 : i32
    %c0_i32_0 = arith.constant 0 : i32
    return %arg0, %c0_i32 : i32, i32
  }
}

</mosaic_0001>

<bundles_post_ra>
// kernel: tpu_custom_call.1
= control target key start
LH: loop header
LB: loop body
LE: loop exit
PB: predicated region body
PF: predicated region fallthrough
CT: control target
= control target key end

     0   :  { %6 = vsyncpa [#allocation3], 0  ;;  %s303_s0 = inlined_call_operand.hbm [shape: f32[2,256], index: 0, kind: input, shape index: {}]   ;;  %s304_s1 = inlined_call_operand.hbm [shape: f32[2,256], index: 1, kind: output, shape index: {}]  }
   0x1   :  { %7 = vsyncpa [#allocation4], 0 }
   0x2   :  { %12 = vsyncadd [#allocation3], 192  ;;  %s254_s6 = smov [#allocation2]   ;;  %s206_s10 = scalar_lea.hbm %s303_s0, 64 }
   0x3   :  { %s13_s7 = sshll.u32 %s254_s6, 4  ;;  %p207_p0 = scmp.ne.s32.totalorder %s303_s0, %s206_s10  ;;  %s14_s7 = int_to_ptr.vmem [resolvable:$true] %s13_s7 }
   0x4   :  { %p210_p1 = scmp.lt.u32.totalorder %s206_s10, %s303_s0 }
   0x6   :  { %p212_p2 = pnand %p210_p1, %p207_p0 }
   0x8   :  { %215 = shalt.err (!%p212_p2)
}
   0x9   :  { %s216_s15 = scalar_lea.vmem %s14_s7, 64  ;;  %s220_s16 = scalar_lea.vmem %s14_s7, 256 }
   0xa   :  { %p217_p3 = scmp.ne.s32.totalorder %s14_s7, %s216_s15  ;;  %p221_p4 = scmp.lt.s32.totalorder %s14_s7, %s14_s7 }
   0xb   :  { %p222_p5 = scmp.lt.s32.totalorder %s220_s16, %s216_s15 }
   0xd   :  { %p223_p6 = por %p222_p5, %p221_p4 }
   0xf   :  { %p224_p7 = pnand %p223_p6, %p217_p3 }
  0x11   :  { %227 = shalt.err (!%p224_p7)
}
  0x12   :  { %s255_s17 = smov 64   ;;  %s256_s18 = smov 4  }
  0x13   :  { %19 = dma.hbm_to_vmem [thread:$0]  %s303_s0, 64, %s14_s7, [#allocation3], %s255_s17, %s255_s17, %s256_s18  }
  0x14   :  { %250 = dma.done.wait [#allocation3], 256  }
  0x15   :  { %251 = vsyncadd [#allocation3], 4294967040  ;;  %v36_v0 = vlaneseq  ;;  %v257_v1 = vmov 1983009808   ;;  %v23_v6 = vld [vmem:[#allocation2] sm:$0xf] }
  0x16   :  { %v34_v2 = vunpack.c.l.s4 %v257_v1  ;;  %v24_v7 = vld [vmem:[#allocation2 + $0x4] sm:$0xf]  ;;  %v25_v8 = vld [vmem:[#allocation2 + $0x8] sm:$0xf]  ;;  %v26_v9 = vld [vmem:[#allocation2 + $0xc] sm:$0xf] }
  0x17   :  { %v37_v3 = vshrl.u32 %v36_v0, 7  ;;  %v31_v10 = vcombine.low %v23_v6, %v24_v7  ;;  %v32_v11 = vcombine.low %v25_v8, %v26_v9  ;;  %v258_v17 = vmov 269488144  }
  0x18   :  { %v35_v4 = vunpack.c.0.s8 %v34_v2  ;;  %v57_v18 = vunpack.c.l.s4 %v258_v17  ;;  %v259_v19 = vmov 842150450   ;;  %v260_v21 = vmov 1414812756  }
  0x19   :  { %v64_v20 = vunpack.c.l.s4 %v259_v19  ;;  %v71_v22 = vunpack.c.l.s4 %v260_v21  ;;  %v261_v23 = vmov 1987475062  }
  0x1a   :  { %v38_v5 = vsub.s32 %v35_v4, %v37_v3  ;;  %v78_v24 = vunpack.c.l.s4 %v261_v23  ;;  %v58_v25 = vunpack.c.0.s8 %v57_v18 }
  0x1b   :  { %v65_v26 = vunpack.c.0.s8 %v64_v20  ;;  %v72_v27 = vunpack.c.0.s8 %v71_v22 }
  0x1c   :  { %v39_v12 = vrot.slane %v31_v10, %v38_v5  ;;  %v46_v13 = vrot.slane %v32_v11, %v38_v5  ;;  %v79_v28 = vunpack.c.0.s8 %v78_v24  ;;  %v61_v29 = vsub.s32 %v58_v25, %v37_v3 }
  0x1d   :  { %v68_v30 = vsub.s32 %v65_v26, %v37_v3  ;;  %v75_v31 = vsub.s32 %v72_v27, %v37_v3 }
  0x1e   :  { %v47_v14 = vcombine.low %v39_v12, %v46_v13  ;;  %v48_v15 = vcombine.high %v39_v12, %v46_v13  ;;  %v82_v32 = vsub.s32 %v79_v28, %v37_v3 }
  0x20   :  { %v51_v16 = vadd.f32 %v48_v15, %v47_v14 }
  0x22   :  { %52 = vadd.xlane.f32.xlu0 %v51_v16 }
  0xaf   :  { %v53_v33 = vpop.xlane.xlu0 %52 }
  0xb0   :  { %v54_v34 = vmul.f32 0.00390625, %v53_v33 }
  0xb2   :  { %v62_v35 = vrot.slane %v54_v34, %v61_v29  ;;  %v69_v36 = vrot.slane %v54_v34, %v68_v30  ;;  %v76_v37 = vrot.slane %v54_v34, %v75_v31  ;;  %v83_v38 = vrot.slane %v54_v34, %v82_v32 }
  0xb4   :  { %v88_v39 = vsub.f32 %v23_v6, %v62_v35  ;;  %v89_v40 = vsub.f32 %v24_v7, %v69_v36  ;;  %v90_v41 = vsub.f32 %v25_v8, %v76_v37  ;;  %v91_v42 = vsub.f32 %v26_v9, %v83_v38 }
  0xb6   :  { %v92_v43 = vmul.f32 %v88_v39, %v88_v39  ;;  %v93_v44 = vmul.f32 %v89_v40, %v89_v40  ;;  %v94_v45 = vmul.f32 %v90_v41, %v90_v41  ;;  %v95_v46 = vmul.f32 %v91_v42, %v91_v42 }
  0xb8   :  { %v100_v47 = vcombine.low %v92_v43, %v93_v44  ;;  %v101_v48 = vcombine.low %v94_v45, %v95_v46 }
  0xba   :  { %v108_v49 = vrot.slane %v100_v47, %v38_v5  ;;  %v115_v50 = vrot.slane %v101_v48, %v38_v5 }
  0xbc   :  { %v116_v51 = vcombine.low %v108_v49, %v115_v50  ;;  %v117_v52 = vcombine.high %v108_v49, %v115_v50 }
  0xbe   :  { %v120_v53 = vadd.f32 %v117_v52, %v116_v51 }
  0xc0   :  { %121 = vadd.xlane.f32.xlu0 %v120_v53 }
 0x14d   :  { %v122_v54 = vpop.xlane.xlu0 %121 }
 0x14e   :  { %v123_v55 = vmul.f32 0.00390625, %v122_v54 }
 0x150   :  { %202 = vrsqrt.f32 %v123_v55  ;;  %vm126_vm0 = vcmp.eq.f32.partialorder %v123_v55, inf  ;;  %v129_v58 = vand.u32 2147483648, %v123_v55  ;;  %vm128_vm1 = vcmp.eq.f32.partialorder %v123_v55, 0.0 }
 0x15a   :  { %v203_v56 = vpop.eup %202 }
 0x15b   :  { %v125_v57 = vmul.f32 %v203_v56, %v123_v55 }
 0x15d   :  { %v127_v59 = vsel %vm126_vm0, %v123_v55, %v125_v57 }
 0x15e   :  { %v130_v60 = vsel %vm128_vm1, %v129_v58, %v127_v59 }
 0x15f   :  { %v131_v61 = vadd.f32 1e-06, %v130_v60 }
 0x161   :  { %204 = vrcp.f32 %v131_v61 }
 0x16b   :  { %v205_v62 = vpop.eup %204 }
 0x16c   :  { %v140_v63 = vrot.slane %v205_v62, %v61_v29  ;;  %v147_v0 = vrot.slane %v205_v62, %v68_v30  ;;  %v154_v1 = vrot.slane %v205_v62, %v75_v31  ;;  %v161_v2 = vrot.slane %v205_v62, %v82_v32 }
 0x16e   :  { %v166_v3 = vmul.f32 %v140_v63, %v88_v39  ;;  %v167_v4 = vmul.f32 %v147_v0, %v89_v40  ;;  %v168_v5 = vmul.f32 %v154_v1, %v90_v41  ;;  %v169_v6 = vmul.f32 %v161_v2, %v91_v42 }
 0x170   :  { %170 = vst [vmem:[#allocation5] sm:$0xf] %v166_v3  ;;  %171 = vst [vmem:[#allocation5 + $0x4] sm:$0xf] %v167_v4 }
 0x171   :  { %172 = vst [vmem:[#allocation5 + $0x8] sm:$0xf] %v168_v5  ;;  %173 = vst [vmem:[#allocation5 + $0xc] sm:$0xf] %v169_v6 }
 0x172   :  { %178 = vsyncadd [#allocation4], 192  ;;  %s262_s0 = smov [#allocation5]  }
 0x173   :  { %s179_s21 = sshll.u32 %s262_s0, 4  ;;  %s180_s21 = int_to_ptr.vmem [resolvable:$true] %s179_s21 }
 0x174   :  { %s228_s22 = scalar_lea.vmem %s180_s21, 64  ;;  %s232_s23 = scalar_lea.vmem %s180_s21, 256 }
 0x175   :  { %p229_p8 = scmp.ne.s32.totalorder %s180_s21, %s228_s22  ;;  %p233_p9 = scmp.lt.s32.totalorder %s180_s21, %s180_s21 }
 0x176   :  { %p234_p10 = scmp.lt.s32.totalorder %s232_s23, %s228_s22 }
 0x178   :  { %p235_p11 = por %p234_p10, %p233_p9 }
 0x17a   :  { %p236_p12 = pnand %p235_p11, %p229_p8 }
 0x17c   :  { %239 = shalt.err (!%p236_p12)
}
 0x17d   :  { %s240_s26 = scalar_lea.hbm %s304_s1, 64 }
 0x17e   :  { %p241_p13 = scmp.ne.s32.totalorder %s304_s1, %s240_s26  ;;  %p244_p0 = scmp.lt.u32.totalorder %s240_s26, %s304_s1 }
 0x180   :  { %p246_p1 = pnand %p244_p0, %p241_p13 }
 0x182   :  { %249 = shalt.err (!%p246_p1)
}
 0x183   :  { %185 = dma.vmem_to_hbm [thread:$0]  %s180_s21, 64, %s304_s1, [#allocation4], %s255_s17, %s255_s17, %s256_s18  }
 0x184   :  { %252 = dma.done.wait [#allocation4], 256  }
 0x185   :  { %253 = vsyncadd [#allocation4], 4294967040 }
 0x186   :  { %189 = vsyncpa [#allocation3], 1 }
 0x187   :  { %190 = vsyncpa [#allocation4], 1 }

</bundles_post_ra>
